<compile_context>
chip_gen: v6e
topology: v6e:2x2x1
jax: 0.10.0
libtpu: 0.0.40
codegen_flags: <defaults>
</compile_context>

<pallas_src>
import jax
import jax.numpy as jnp
from jax.experimental import pallas as pl
from jax.experimental.pallas import tpu as pltpu


def _conv1x1_kernel(x_ref, w_ref, b_ref, o_ref):
    # x_ref: (NB, C_in, T)   pixel tile(s), pixels on lanes
    # w_ref: (C_out, C_in)   resident weight (activation dtype)
    # b_ref: (C_out, 1)      resident bias (f32)
    # o_ref: (NB, C_out, T)
    w = w_ref[...]
    b = b_ref[...]
    # NB is a small static constant -> unrolled well-supported 2-D MXU dots.
    for i in range(x_ref.shape[0]):
        acc = jnp.dot(w, x_ref[i], preferred_element_type=jnp.float32)
        o_ref[i] = (acc + b).astype(o_ref.dtype)


def _round_down(v, m):
    return (v // m) * m


def _choose_tiling(N, C_in, C_out, HW, itemsize,
                   target_x_bytes, vmem_budget, max_nb=16):
    """Pick (NB images per step, tile_hw pixels per step).

    Sized so each grid step streams a few MiB of activations (amortizing the
    ~0.35 us per-step overhead toward the HBM roofline) while the double-
    buffered x + y tiles, the f32 accumulator and the double-buffered weight
    stay under `vmem_budget`.
    """
    want_pixels = max(128, target_x_bytes // max(1, C_in * itemsize))

    if HW >= want_pixels:
        # Tile within a single image; multiple of 512 lanes when possible, 128 min.
        NB = 1
        m = 512 if want_pixels >= 512 else 128
        tile_hw = min(HW, max(128, _round_down(min(HW, want_pixels), m)))
    else:
        # Small image: take the full HW extent and batch several images per step.
        tile_hw = HW
        NB = min(N, max(1, want_pixels // HW), max_nb)

    # Cap by VMEM budget (double-buffered x, y, W/b + f32 accumulator).
    def footprint(nb, thw):
        xb = 2 * nb * C_in * thw * itemsize
        yb = 2 * nb * C_out * thw * itemsize
        acc = nb * C_out * thw * 4
        wb = 2 * (C_out * C_in * itemsize) + 2 * C_out * 4
        return xb + yb + acc + wb

    while footprint(NB, tile_hw) > vmem_budget:
        if NB > 1:
            NB = max(1, NB // 2)
        elif tile_hw > 128:
            new = _round_down(max(128, tile_hw // 2), 128)
            if new == tile_hw:
                break
            tile_hw = new
        else:
            break

    # v7x megacore: both "parallel" grid axes shard across the 2 TensorCores.
    # For non-trivial problems make sure there are >= 4 grid steps to share.
    total_x_bytes = N * C_in * HW * itemsize
    if total_x_bytes >= (1 << 20):
        def n_steps(nb, thw):
            return pl.cdiv(N, nb) * pl.cdiv(HW, thw)
        while n_steps(NB, tile_hw) < 4:
            if NB > 1:
                NB = max(1, (NB + 1) // 2)
            elif tile_hw > 256:
                tile_hw = _round_down(max(128, tile_hw // 2), 128)
            else:
                break

    return NB, tile_hw


def outconv_forward(x_nchw, weight, bias, *,
                    target_x_bytes=4 << 20, vmem_budget=24 << 20):
    """1x1 conv forward (== nn.Conv2d(in_ch, out_ch, 1)).

    x_nchw : (N, C_in, H, W)
    weight : (C_out, C_in, 1, 1)   (PyTorch Conv2d layout)
    bias   : (C_out,)
    returns (N, C_out, H, W)
    """
    N, C_in, H, W = x_nchw.shape
    C_out = weight.shape[0]
    HW = H * W

    # Pure reshapes only - no transposes, no padded copies.
    x = x_nchw.reshape(N, C_in, HW)
    # Cast weight to the activation dtype so bf16 inputs use the native bf16
    # MXU path (accumulation stays f32 inside the kernel).
    w = weight.reshape(C_out, C_in).astype(x_nchw.dtype)
    # Bias / epilogue math in f32 (safe on v5e's f32-only VPU; bias is tiny).
    b = bias.reshape(C_out, 1).astype(jnp.float32)

    itemsize = jnp.dtype(x_nchw.dtype).itemsize
    NB, tile_hw = _choose_tiling(N, C_in, C_out, HW, itemsize,
                                 target_x_bytes, vmem_budget)
    grid = (pl.cdiv(N, NB), pl.cdiv(HW, tile_hw))  # ragged tails masked by Pallas

    y = pl.pallas_call(
        _conv1x1_kernel,
        out_shape=jax.ShapeDtypeStruct((N, C_out, HW), x_nchw.dtype),
        grid_spec=pltpu.PrefetchScalarGridSpec(
            num_scalar_prefetch=0,
            grid=grid,
            in_specs=[
                pl.BlockSpec((NB, C_in, tile_hw), lambda n, t: (n, 0, t)),  # pixel tiles
                pl.BlockSpec((C_out, C_in), lambda n, t: (0, 0)),           # resident W
                pl.BlockSpec((C_out, 1), lambda n, t: (0, 0)),              # resident bias
            ],
            out_specs=pl.BlockSpec((NB, C_out, tile_hw), lambda n, t: (n, 0, t)),
        ),
        compiler_params=pltpu.CompilerParams(
            dimension_semantics=("parallel", "parallel"),
            # Explicit scoped-VMEM limit: raises v5e's 16 MiB default, matches the
            # v6e/v7x 32 MiB default, leaves headroom on v7x (64 MiB physical).
            vmem_limit_bytes=32 * 1024 * 1024,
        ),
    )(x, w, b)

    return y.reshape(N, C_out, H, W)


def init_outconv_params(key, in_ch, out_ch, dtype=jnp.float32):
    """Deterministic init matching nn.Conv2d(in_ch, out_ch, 1) param shapes."""
    kw, kb = jax.random.split(key)
    bound = 1.0 / (in_ch ** 0.5)  # PyTorch default: U(-1/sqrt(fan_in), +)
    weight = jax.random.uniform(kw, (out_ch, in_ch, 1, 1), dtype,
                                minval=-bound, maxval=bound)
    bias = jax.random.uniform(kb, (out_ch,), dtype, minval=-bound, maxval=bound)
    return weight, bias


def _reference(x, weight, bias):
    C_out, C_in = weight.shape[0], weight.shape[1]
    return (jnp.einsum("nchw,oc->nohw", x, weight.reshape(C_out, C_in))
            + bias.reshape(1, C_out, 1, 1))


def _check(x, weight, bias, **kw):
    y = jax.block_until_ready(outconv_forward(x, weight, bias, **kw))
    y_ref = _reference(x, weight, bias)
    assert y.shape == y_ref.shape
    assert jnp.allclose(y, y_ref, atol=1e-5, rtol=1e-5), \
        f"mismatch, max err {jnp.max(jnp.abs(y - y_ref))}"
    return y


if __name__ == "__main__":
    key = jax.random.PRNGKey(0)
    k1, k2, k3, k4, k5, k6 = jax.random.split(key, 6)

    # 1) Small canonical shape (batched-images path, single grid step).
    N, C_in, H, W, C_out = 2, 4, 16, 16, 3
    x = jax.random.normal(k1, (N, C_in, H, W), jnp.float32)
    weight, bias = init_outconv_params(k2, C_in, C_out)
    _check(x, weight, bias)

    # 2) Exercise HW tiling with a ragged last pixel tile (tiny target to force it).
    x2 = jax.random.normal(k3, (1, 8, 48, 48), jnp.float32)
    w2, b2 = init_outconv_params(k4, 8, 3)
    _check(x2, w2, b2, target_x_bytes=16 << 10)   # tile_hw=512 over HW=2304 -> ragged tail

    # 3) Exercise NB-image batching with a ragged last batch block.
    x3 = jax.random.normal(k5, (5, 4, 8, 8), jnp.float32)
    w3, b3 = init_outconv_params(k6, 4, 2)
    _check(x3, w3, b3, target_x_bytes=2 << 10)    # NB=2 over N=5 -> ragged batch tail

    print("KERNEL_OK")
</pallas_src>

<mosaic_0001>
module attributes {stable_mosaic.version = 11 : i64} {
  func.func @_conv1x1_kernel(%arg0: i32, %arg1: i32, %arg2: memref<2x4x256xf32, #tpu.memory_space<vmem>>, %arg3: memref<3x4xf32, #tpu.memory_space<vmem>>, %arg4: memref<3x1xf32, #tpu.memory_space<vmem>>, %arg5: memref<2x3x256xf32, #tpu.memory_space<vmem>>) attributes {dimension_semantics = [#tpu.dimension_semantics<parallel>, #tpu.dimension_semantics<parallel>], iteration_bounds = array<i64: 1, 1>, scalar_prefetch = 0 : i64, scratch_operands = 0 : i64, tpu.core_type = #tpu.core_type<tc>, window_params = [{transform_indices = @transform_0, window_bounds = array<i64: 2, 4, 256>}, {pipeline_mode = #tpu.pipeline_mode<synchronous>, transform_indices = @transform_1, window_bounds = array<i64: 3, 4>}, {pipeline_mode = #tpu.pipeline_mode<synchronous>, transform_indices = @transform_2, window_bounds = array<i64: 3, 1>}, {transform_indices = @transform_3, window_bounds = array<i64: 2, 3, 256>}]} {
    %c0 = arith.constant 0 : index
    %c0_0 = arith.constant 0 : index
    %0 = vector.load %arg3[%c0, %c0_0] : memref<3x4xf32, #tpu.memory_space<vmem>>, vector<3x4xf32>
    %c0_1 = arith.constant 0 : index
    %c0_2 = arith.constant 0 : index
    %1 = vector.load %arg4[%c0_1, %c0_2] : memref<3x1xf32, #tpu.memory_space<vmem>>, vector<3x1xf32>
    %c0_3 = arith.constant 0 : index
    %c0_4 = arith.constant 0 : index
    %c0_5 = arith.constant 0 : index
    %2 = vector.load %arg2[%c0_3, %c0_4, %c0_5] : memref<2x4x256xf32, #tpu.memory_space<vmem>>, vector<1x4x256xf32>
    %3 = vector.shape_cast %2 : vector<1x4x256xf32> to vector<4x256xf32>
    %cst = arith.constant dense<0.000000e+00> : vector<3x256xf32>
    %4 = tpu.matmul %0, %3, %cst {dimension_numbers = #tpu.dot_dimension_numbers<[1], [0], [0], [1], [0, 0, 1, 1], [], []>} : vector<3x4xf32>, vector<4x256xf32>, vector<3x256xf32> -> vector<3x256xf32>
    %5 = vector.broadcast %1 : vector<3x1xf32> to vector<3x256xf32>
    %6 = arith.addf %4, %5 : vector<3x256xf32>
    %c0_6 = arith.constant 0 : index
    %c0_7 = arith.constant 0 : index
    %c0_8 = arith.constant 0 : index
    %7 = vector.load %arg5[%c0_6, %c0_7, %c0_8] : memref<2x3x256xf32, #tpu.memory_space<vmem>>, vector<1x3x256xf32>
    %8 = vector.shape_cast %7 : vector<1x3x256xf32> to vector<3x256xf32>
    %9 = vector.shape_cast %6 : vector<3x256xf32> to vector<1x3x256xf32>
    tpu.vector_store %arg5[%c0_6, %c0_7, %c0_8], %9 {strides = array<i32>} : memref<2x3x256xf32, #tpu.memory_space<vmem>>, vector<1x3x256xf32>,
    %c1 = arith.constant 1 : index
    %c0_9 = arith.constant 0 : index
    %c0_10 = arith.constant 0 : index
    %10 = vector.load %arg2[%c1, %c0_9, %c0_10] : memref<2x4x256xf32, #tpu.memory_space<vmem>>, vector<1x4x256xf32>
    %11 = vector.shape_cast %10 : vector<1x4x256xf32> to vector<4x256xf32>
    %cst_11 = arith.constant dense<0.000000e+00> : vector<3x256xf32>
    %12 = tpu.matmul %0, %11, %cst_11 {dimension_numbers = #tpu.dot_dimension_numbers<[1], [0], [0], [1], [0, 0, 1, 1], [], []>} : vector<3x4xf32>, vector<4x256xf32>, vector<3x256xf32> -> vector<3x256xf32>
    %13 = vector.broadcast %1 : vector<3x1xf32> to vector<3x256xf32>
    %14 = arith.addf %12, %13 : vector<3x256xf32>
    %c1_12 = arith.constant 1 : index
    %c0_13 = arith.constant 0 : index
    %c0_14 = arith.constant 0 : index
    %15 = vector.load %arg5[%c1_12, %c0_13, %c0_14] : memref<2x3x256xf32, #tpu.memory_space<vmem>>, vector<1x3x256xf32>
    %16 = vector.shape_cast %15 : vector<1x3x256xf32> to vector<3x256xf32>
    %17 = vector.shape_cast %14 : vector<3x256xf32> to vector<1x3x256xf32>
    tpu.vector_store %arg5[%c1_12, %c0_13, %c0_14], %17 {strides = array<i32>} : memref<2x3x256xf32, #tpu.memory_space<vmem>>, vector<1x3x256xf32>,
    return
  }
  func.func @transform_0(%arg0: i32, %arg1: i32) -> (i32, i32, i32) {
    %c0_i32 = arith.constant 0 : i32
    %c0_i32_0 = arith.constant 0 : i32
    return %arg0, %c0_i32, %arg1 : i32, i32, i32
  }
  func.func @transform_1(%arg0: i32, %arg1: i32) -> (i32, i32) {
    %c0_i32 = arith.constant 0 : i32
    %c0_i32_0 = arith.constant 0 : i32
    %c0_i32_1 = arith.constant 0 : i32
    return %c0_i32, %c0_i32_0 : i32, i32
  }
  func.func @transform_2(%arg0: i32, %arg1: i32) -> (i32, i32) {
    %c0_i32 = arith.constant 0 : i32
    %c0_i32_0 = arith.constant 0 : i32
    %c0_i32_1 = arith.constant 0 : i32
    return %c0_i32, %c0_i32_0 : i32, i32
  }
  func.func @transform_3(%arg0: i32, %arg1: i32) -> (i32, i32, i32) {
    %c0_i32 = arith.constant 0 : i32
    %c0_i32_0 = arith.constant 0 : i32
    return %arg0, %c0_i32, %arg1 : i32, i32, i32
  }
}

</mosaic_0001>

<bundles_post_ra>
// kernel: tpu_custom_call.1
= control target key start
LH: loop header
LB: loop body
LE: loop exit
PB: predicated region body
PF: predicated region fallthrough
CT: control target
= control target key end

     0   :  { %8 = vsyncpa [#allocation3], 0  ;;  %s250_s12 = smov [#allocation2]   ;;  %s290_s0 = inlined_call_operand.hbm [shape: f32[2,4,256], index: 0, kind: input, shape index: {}]   ;;  %s291_s1 = inlined_call_operand.vmem [shape: f32[3,4], index: 1, kind: input, shape index: {}]   ;;  %s292_s2 = inlined_call_operand.vmem [shape: f32[3,1], index: 2, kind: input, shape index: {}]   ;;  %s293_s3 = inlined_call_operand.vmem [shape: f32[2,3,256], index: 3, kind: output, shape index: {}]  }
   0x1   :  { %s14_s13 = sshll.u32 %s250_s12, 4  ;;  %s15_s13 = int_to_ptr.vmem [resolvable:$true] %s14_s13 }
   0x2   :  { %s236_s14 = scalar_lea.vmem %s15_s13, 256  ;;  %p241_p1 = scmp.lt.s32.totalorder %s15_s13, %s15_s13 }
   0x3   :  { %p237_p0 = scmp.ne.s32.totalorder %s15_s13, %s236_s14  ;;  %p242_p2 = scmp.lt.s32.totalorder %s236_s14, %s236_s14 }
   0x5   :  { %p243_p3 = por %p242_p2, %p241_p1 }
   0x7   :  { %p244_p4 = pnand %p243_p3, %p237_p0 }
   0x9   :  { %247 = shalt.err (!%p244_p4)
}
   0xa   :  { %s251_s15 = smov 128   ;;  %s252_s16 = smov 8  }
   0xb   :  { %20 = dma.hbm_to_vmem [thread:$0]  %s290_s0, 256, %s15_s13, [#allocation3], %s251_s15, %s251_s15, %s252_s16  }
   0xc   :  { %248 = dma.done.wait [#allocation3], 256  }
   0xd   :  { %249 = vsyncadd [#allocation3], 4294967040  ;;  %v253_v0 = vmov 0.0   ;;  %v254_v1 = vmov 0   ;;  %v30_v2 = vld [vmem:[#allocation2] sm:$0xff]  ;;  %vm42_vm0 = vcmask 1043456  }
   0xe   :  { %111 = vmatprep.mubr.f32.mxu0 %v253_v0  ;;  %195 = vmatprep.mubr.f32.mxu1 %v253_v0  ;;  %v124_v3 = vld [vmem:[#allocation2 + $0x8] sm:$0xff]  ;;  %v37_v4 = vcombine.high %v30_v2, %v30_v2  ;;  %v29_v6 = vld [vmem:[%s292_s2] sm:$0x7]  ;;  %vm38_vm1 = vcmask 31744  }
   0xf   :  { %225 = vset.pattern.permute.xlu0 %v254_v1  ;;  %v126_v5 = vcombine.high %v124_v3, %v124_v3  ;;  %v28_v7 = vld [vmem:[%s291_s1] sm:$0x7] }
  0x10   :  { %33 = vperm.xlu0 %225, %v29_v6   ;;  %213 = vmatprep.subr.msk.mxu0 %vm42_vm0, %v37_v4 }
  0x11   :  { %216 = vmatprep.subr.msk.mxu1 %vm42_vm0, %v126_v5  ;;  %214 = vmatpush1.msk.msra.mxu0 %vm42_vm0, %v30_v2 }
  0x12   :  { %217 = vmatpush1.msk.msra.mxu1 %vm42_vm0, %v124_v3  ;;  %215 = vmatmul.mubr.msk.f32.vlgmr.msra.gmra.mxu0 %vm38_vm1, %v28_v7 }
  0x13   :  { %218 = vmatmul.mubr.msk.f32.vlgmr.msra.gmra.mxu1 %vm38_vm1, %v28_v7 }
  0x8b   :  { %v34_v8 = vpop.permute.xlu0 %33 }
  0xd2   :  { %v113_v9 = vpop.f32.mrf.mxu0 }
  0xd3   :  { %v197_v10 = vpop.f32.mrf.mxu1  ;;  %v114_v13 = vadd.f32 %v113_v9, %v34_v8 }
  0xd4   :  { %v115_v11 = vpop.f32.mrf.mxu0  ;;  %v198_v14 = vadd.f32 %v197_v10, %v34_v8 }
  0xd5   :  { %v199_v12 = vpop.f32.mrf.mxu1  ;;  %v116_v15 = vadd.f32 %v115_v11, %v34_v8 }
  0xd6   :  { %v200_v16 = vadd.f32 %v199_v12, %v34_v8 }
  0xd7   :  { %v120_v17 = vcombine.low %v114_v13, %v116_v15 }
  0xd8   :  { %v204_v18 = vcombine.low %v198_v14, %v200_v16 }
  0xd9   :  { %122 = vst [vmem:[%s293_s3] sm:$0x77] %v120_v17 }
  0xda   :  { %219 = vst [vmem:[%s293_s3 + $0x8] sm:$0x77] %v204_v18 }
  0xdb   :  { %212 = vsyncpa [#allocation3], 1 }

</bundles_post_ra>
